<compile_context>
chip_gen: v5e
topology: v5e:2x2
jax: 0.10.0
libtpu: 0.0.40
codegen_flags: <defaults>
</compile_context>

<pallas_src>
import functools
import math

import jax
import jax.numpy as jnp
from jax.experimental import pallas as pl
from jax.experimental.pallas import tpu as pltpu

_LANES = 128
_SUBLANES = 8


def _dice_kernel(ps_ref, ts_ref, out_ref, inter_ref, total_ref, *, eps):
    # ps_ref / ts_ref: (1, TR, 128) tiles of sample i = program_id(0),
    # spatial tile j = program_id(1).  Reduction axis (j) is innermost.
    j = pl.program_id(1)
    nj = pl.num_programs(1)

    p = jax.nn.sigmoid(ps_ref[...].astype(jnp.float32))
    t = ts_ref[...].astype(jnp.float32)  # cast in-VMEM; inputs stay narrow in HBM
    prod = t * p
    both = t + p  # fused sum(t) + sum(p) -> single accumulator stream

    # Fold (1, TR, 128) -> (8, 128) partials with pure VPU vreg adds; the
    # reshape groups whole (8, 128) vregs so no cross-lane/sublane movement.
    prod_p = jnp.sum(prod.reshape(-1, _SUBLANES, _LANES), axis=0)
    both_p = jnp.sum(both.reshape(-1, _SUBLANES, _LANES), axis=0)

    @pl.when(j == 0)
    def _():
        inter_ref[...] = prod_p
        total_ref[...] = both_p

    @pl.when(j > 0)
    def _():
        inter_ref[...] += prod_p
        total_ref[...] += both_p

    @pl.when(j == nj - 1)
    def _():
        # Only two full (XLU) reductions per *sample*, on an (8, 128) tile.
        inter = jnp.sum(inter_ref[...])
        total = jnp.sum(total_ref[...])
        dice = (2.0 * inter + eps) / (total + eps)
        out_ref[...] = jnp.full((1, _SUBLANES, _LANES), dice, dtype=jnp.float32)


def dice_loss(ps, ts, eps=1e-7, max_tile_rows=2048):
    if ps.shape != ts.shape:
        raise ValueError(
            f"Prediction shape {ps.shape} and target shape {ts.shape} do not match."
        )
    N = ps.shape[0]
    M = math.prod(ps.shape[1:])

    # Flatten each sample; keep target dtype native (kernel casts in VMEM).
    ps2 = ps.reshape(N, M)
    ts2 = ts.reshape(N, M)

    # Choose the spatial tile: TR rows of 128 lanes, TR a multiple of 8,
    # capped at max_tile_rows; then pad each sample up to a multiple of
    # TR * 128 so every grid step sees a full, aligned block.
    max_tile_rows = max(_SUBLANES, (max_tile_rows // _SUBLANES) * _SUBLANES)
    r_min = pl.cdiv(M, _SUBLANES * _LANES) * _SUBLANES  # rows needed, mult. of 8
    tr = min(r_min, max_tile_rows)
    R = pl.cdiv(r_min, tr) * tr
    M_pad = R * _LANES

    if M_pad != M:
        pad = M_pad - M
        # Pad logits with a huge negative value (sigmoid -> exactly 0) and
        # targets with 0 so padding contributes nothing to intersection/total.
        ps2 = jnp.pad(ps2, ((0, 0), (0, pad)), constant_values=-1e30)
        ts2 = jnp.pad(ts2, ((0, 0), (0, pad)), constant_values=0)

    ps3 = ps2.reshape(N, R, _LANES)
    ts3 = ts2.reshape(N, R, _LANES)

    grid = (N, R // tr)
    in_spec = pl.BlockSpec((1, tr, _LANES), lambda i, j: (i, j, 0))

    out = pl.pallas_call(
        functools.partial(_dice_kernel, eps=eps),
        out_shape=jax.ShapeDtypeStruct((N, _SUBLANES, _LANES), jnp.float32),
        grid_spec=pltpu.PrefetchScalarGridSpec(
            num_scalar_prefetch=0,
            grid=grid,
            in_specs=[in_spec, in_spec],
            out_specs=pl.BlockSpec((1, _SUBLANES, _LANES), lambda i, j: (i, 0, 0)),
            scratch_shapes=[
                pltpu.VMEM((_SUBLANES, _LANES), jnp.float32),  # intersection partials
                pltpu.VMEM((_SUBLANES, _LANES), jnp.float32),  # total partials
            ],
        ),
        compiler_params=pltpu.CompilerParams(
            # Batch axis independent (megacore); spatial axis is a running
            # reduction with a resident output block.
            dimension_semantics=("parallel", "arbitrary"),
        ),
    )(ps3, ts3)

    dice = out[:, 0, 0]  # per-sample dice score
    return 1.0 - jnp.mean(dice)  # batch mean done in plain JAX


def _dice_loss_ref(ps, ts, eps=1e-7):
    p = jax.nn.sigmoid(ps.astype(jnp.float32))
    t = ts.astype(jnp.float32)
    axes = tuple(range(1, ps.ndim))
    inter = jnp.sum(t * p, axis=axes)
    total = jnp.sum(t, axis=axes) + jnp.sum(p, axis=axes)
    dice = (2.0 * inter + eps) / (total + eps)
    return 1.0 - dice.mean()


if __name__ == "__main__":
    key = jax.random.PRNGKey(0)
    k1, k2, k3, k4 = jax.random.split(key, 4)

    # Primary case: aligned spatial size.
    N, C, H, W = 2, 4, 16, 16
    ps = jax.random.normal(k1, (N, C, H, W), dtype=jnp.float32)
    ts = (jax.random.uniform(k2, (N, C, H, W)) > 0.5).astype(jnp.float32)
    loss = jax.block_until_ready(dice_loss(ps, ts))
    ref = jax.block_until_ready(_dice_loss_ref(ps, ts))
    assert jnp.allclose(loss, ref, atol=1e-5, rtol=1e-5), (loss, ref)

    # Odd-sized case exercising the padding path.
    ps_o = jax.random.normal(k3, (2, 3, 7, 5), dtype=jnp.float32)
    ts_o = (jax.random.uniform(k4, (2, 3, 7, 5)) > 0.5).astype(jnp.float32)
    loss_o = jax.block_until_ready(dice_loss(ps_o, ts_o))
    ref_o = jax.block_until_ready(_dice_loss_ref(ps_o, ts_o))
    assert jnp.allclose(loss_o, ref_o, atol=1e-5, rtol=1e-5), (loss_o, ref_o)

    print("KERNEL_OK")
</pallas_src>

<mosaic_0001>
module attributes {stable_mosaic.version = 11 : i64} {
  func.func @_dice_kernel(%arg0: i32, %arg1: i32, %arg2: memref<1x8x128xf32, #tpu.memory_space<vmem>>, %arg3: memref<1x8x128xf32, #tpu.memory_space<vmem>>, %arg4: memref<1x8x128xf32, #tpu.memory_space<vmem>>, %arg5: memref<8x128xf32, #tpu.memory_space<vmem>>, %arg6: memref<8x128xf32, #tpu.memory_space<vmem>>) attributes {dimension_semantics = [#tpu.dimension_semantics<parallel>, #tpu.dimension_semantics<arbitrary>], iteration_bounds = array<i64: 2, 1>, scalar_prefetch = 0 : i64, scratch_operands = 2 : i64, tpu.core_type = #tpu.core_type<tc>, window_params = [{transform_indices = @transform_0, window_bounds = array<i64: 1, 8, 128>}, {transform_indices = @transform_1, window_bounds = array<i64: 1, 8, 128>}, {transform_indices = @transform_2, window_bounds = array<i64: 1, 8, 128>}]} {
    %c0 = arith.constant 0 : index
    %c0_0 = arith.constant 0 : index
    %c0_1 = arith.constant 0 : index
    %0 = vector.load %arg2[%c0, %c0_0, %c0_1] : memref<1x8x128xf32, #tpu.memory_space<vmem>>, vector<1x8x128xf32>
    %1 = arith.negf %0 : vector<1x8x128xf32>
    %2 = math.exp %1 : vector<1x8x128xf32>
    %cst = arith.constant 1.000000e+00 : f32
    %3 = vector.broadcast %cst : f32 to vector<1x8x128xf32>
    %4 = arith.addf %3, %2 : vector<1x8x128xf32>
    %5 = arith.divf %3, %4 : vector<1x8x128xf32>
    %c0_2 = arith.constant 0 : index
    %c0_3 = arith.constant 0 : index
    %c0_4 = arith.constant 0 : index
    %6 = vector.load %arg3[%c0_2, %c0_3, %c0_4] : memref<1x8x128xf32, #tpu.memory_space<vmem>>, vector<1x8x128xf32>
    %7 = arith.mulf %6, %5 : vector<1x8x128xf32>
    %8 = arith.addf %6, %5 : vector<1x8x128xf32>
    %cst_5 = arith.constant dense<0.000000e+00> : vector<8x128xf32>
    %9 = vector.multi_reduction <add>, %7, %cst_5 [0] : vector<1x8x128xf32> to vector<8x128xf32>
    %cst_6 = arith.constant dense<0.000000e+00> : vector<8x128xf32>
    %10 = vector.multi_reduction <add>, %8, %cst_6 [0] : vector<1x8x128xf32> to vector<8x128xf32>
    %c0_i32 = arith.constant 0 : i32
    %11 = arith.cmpi eq, %arg1, %c0_i32 : i32
    %12 = arith.extui %11 : i1 to i32
    %c0_i32_7 = arith.constant 0 : i32
    %13 = arith.cmpi ne, %12, %c0_i32_7 : i32
    scf.if %13 {
      %c0_12 = arith.constant 0 : index
      %c0_13 = arith.constant 0 : index
      %20 = vector.load %arg5[%c0_12, %c0_13] : memref<8x128xf32, #tpu.memory_space<vmem>>, vector<8x128xf32>
      tpu.vector_store %arg5[%c0_12, %c0_13], %9 {strides = array<i32>} : memref<8x128xf32, #tpu.memory_space<vmem>>, vector<8x128xf32>,
      %c0_14 = arith.constant 0 : index
      %c0_15 = arith.constant 0 : index
      %21 = vector.load %arg6[%c0_14, %c0_15] : memref<8x128xf32, #tpu.memory_space<vmem>>, vector<8x128xf32>
      tpu.vector_store %arg6[%c0_14, %c0_15], %10 {strides = array<i32>} : memref<8x128xf32, #tpu.memory_space<vmem>>, vector<8x128xf32>,
    } else {
    }
    %c0_i32_8 = arith.constant 0 : i32
    %14 = arith.cmpi sgt, %arg1, %c0_i32_8 : i32
    %15 = arith.extui %14 : i1 to i32
    %c0_i32_9 = arith.constant 0 : i32
    %16 = arith.cmpi ne, %15, %c0_i32_9 : i32
    scf.if %16 {
      %c0_12 = arith.constant 0 : index
      %c0_13 = arith.constant 0 : index
      %20 = vector.load %arg5[%c0_12, %c0_13] : memref<8x128xf32, #tpu.memory_space<vmem>>, vector<8x128xf32>
      %21 = arith.addf %20, %9 : vector<8x128xf32>
      %c0_14 = arith.constant 0 : index
      %c0_15 = arith.constant 0 : index
      %22 = vector.load %arg5[%c0_14, %c0_15] : memref<8x128xf32, #tpu.memory_space<vmem>>, vector<8x128xf32>
      tpu.vector_store %arg5[%c0_14, %c0_15], %21 {strides = array<i32>} : memref<8x128xf32, #tpu.memory_space<vmem>>, vector<8x128xf32>,
      %c0_16 = arith.constant 0 : index
      %c0_17 = arith.constant 0 : index
      %23 = vector.load %arg6[%c0_16, %c0_17] : memref<8x128xf32, #tpu.memory_space<vmem>>, vector<8x128xf32>
      %24 = arith.addf %23, %10 : vector<8x128xf32>
      %c0_18 = arith.constant 0 : index
      %c0_19 = arith.constant 0 : index
      %25 = vector.load %arg6[%c0_18, %c0_19] : memref<8x128xf32, #tpu.memory_space<vmem>>, vector<8x128xf32>
      tpu.vector_store %arg6[%c0_18, %c0_19], %24 {strides = array<i32>} : memref<8x128xf32, #tpu.memory_space<vmem>>, vector<8x128xf32>,
    } else {
    }
    %c0_i32_10 = arith.constant 0 : i32
    %17 = arith.cmpi eq, %arg1, %c0_i32_10 : i32
    %18 = arith.extui %17 : i1 to i32
    %c0_i32_11 = arith.constant 0 : i32
    %19 = arith.cmpi ne, %18, %c0_i32_11 : i32
    scf.if %19 {
      %c0_12 = arith.constant 0 : index
      %c0_13 = arith.constant 0 : index
      %20 = vector.load %arg5[%c0_12, %c0_13] : memref<8x128xf32, #tpu.memory_space<vmem>>, vector<8x128xf32>
      %21 = vector.shape_cast %20 : vector<8x128xf32> to vector<1x8x128xf32>
      %cst_14 = arith.constant dense<0.000000e+00> : vector<1xf32>
      %22 = vector.multi_reduction <add>, %21, %cst_14 [1, 2] : vector<1x8x128xf32> to vector<1xf32>
      %23 = vector.shape_cast %22 : vector<1xf32> to vector<1x1x1xf32>
      %24 = vector.extract %23[0, 0, 0] : f32 from vector<1x1x1xf32>
      %c0_15 = arith.constant 0 : index
      %c0_16 = arith.constant 0 : index
      %25 = vector.load %arg6[%c0_15, %c0_16] : memref<8x128xf32, #tpu.memory_space<vmem>>, vector<8x128xf32>
      %26 = vector.shape_cast %25 : vector<8x128xf32> to vector<1x8x128xf32>
      %cst_17 = arith.constant dense<0.000000e+00> : vector<1xf32>
      %27 = vector.multi_reduction <add>, %26, %cst_17 [1, 2] : vector<1x8x128xf32> to vector<1xf32>
      %28 = vector.shape_cast %27 : vector<1xf32> to vector<1x1x1xf32>
      %29 = vector.extract %28[0, 0, 0] : f32 from vector<1x1x1xf32>
      %cst_18 = arith.constant 2.000000e+00 : f32
      %30 = arith.mulf %cst_18, %24 : f32
      %cst_19 = arith.constant 1.000000e-07 : f32
      %31 = arith.addf %30, %cst_19 : f32
      %cst_20 = arith.constant 1.000000e-07 : f32
      %32 = arith.addf %29, %cst_20 : f32
      %33 = arith.divf %31, %32 : f32
      %34 = vector.broadcast %33 : f32 to vector<1x8x128xf32>
      %c0_21 = arith.constant 0 : index
      %c0_22 = arith.constant 0 : index
      %c0_23 = arith.constant 0 : index
      %35 = vector.load %arg4[%c0_21, %c0_22, %c0_23] : memref<1x8x128xf32, #tpu.memory_space<vmem>>, vector<1x8x128xf32>
      tpu.vector_store %arg4[%c0_21, %c0_22, %c0_23], %34 {strides = array<i32>} : memref<1x8x128xf32, #tpu.memory_space<vmem>>, vector<1x8x128xf32>,
    } else {
    }
    return
  }
  func.func @transform_0(%arg0: i32, %arg1: i32) -> (i32, i32, i32) {
    %c0_i32 = arith.constant 0 : i32
    %c0_i32_0 = arith.constant 0 : i32
    return %arg0, %arg1, %c0_i32 : i32, i32, i32
  }
  func.func @transform_1(%arg0: i32, %arg1: i32) -> (i32, i32, i32) {
    %c0_i32 = arith.constant 0 : i32
    %c0_i32_0 = arith.constant 0 : i32
    return %arg0, %arg1, %c0_i32 : i32, i32, i32
  }
  func.func @transform_2(%arg0: i32, %arg1: i32) -> (i32, i32, i32) {
    %c0_i32 = arith.constant 0 : i32
    %c0_i32_0 = arith.constant 0 : i32
    %c0_i32_1 = arith.constant 0 : i32
    return %arg0, %c0_i32, %c0_i32_0 : i32, i32, i32
  }
}

</mosaic_0001>

<bundles_post_ra>
// kernel: tpu_custom_call.1
= control target key start
LH: loop header
LB: loop body
LE: loop exit
PB: predicated region body
PF: predicated region fallthrough
CT: control target
= control target key end

     0   :  { %7 = vsyncpa [#allocation5], 0  ;;  %s815_s0 = inlined_call_operand.hbm [shape: f32[2,8,128], index: 0, kind: input, shape index: {}]   ;;  %s816_s1 = inlined_call_operand.hbm [shape: f32[2,8,128], index: 1, kind: input, shape index: {}]   ;;  %s817_s2 = inlined_call_operand.hbm [shape: f32[2,8,128], index: 2, kind: output, shape index: {}]  }
   0x1   :  { %9 = vsyncpa [#allocation5 + $0x1], 0 }
   0x2   :  { %10 = vsyncpa [#allocation8], 0 }
   0x3   :  { %12 = vsyncpa [#allocation8 + $0x1], 0 }
   0x4   :  { %13 = vsyncpa [#allocation6], 0 }
   0x5   :  { %15 = vsyncpa [#allocation6 + $0x1], 0  ;;  %s682_s9 = smov 0   ;;  %s684_s10 = smov 0  }
   0x6   :  { %s686_s11 = smov 0   ;;  %s688_s12 = smov 0  }
   0x7   :  { %s690_s13 = smov 0   ;;  %s692_s14 = smov 0  }
   0x8 LB: > { %s423_s15 = sadd.s32 4294967295, %s665_s14   ;;  %s424_s16 = sadd.s32 4294967294, %s665_s14   ;;  %s665_s14 = sphi %s692_s14, %s21_s14   ;;  %s661_s13 = sphi %s690_s13, %s826_s13   ;;  %s657_s12 = sphi %s688_s12, %s825_s12   ;;  %s653_s11 = sphi %s686_s11, %s824_s11   ;;  %s649_s10 = sphi %s684_s10, %s823_s10   ;;  %s645_s9 = sphi %s682_s9, %s822_s9  }
   0x9   : > { %s33_s17 = sadd.s32 1, %s661_s13  ;;  %s42_s18 = sadd.s32 1, %s653_s11 }
   0xa   : > { %p35_p0 = scmp.ge.s32.totalorder %s33_s17, 2  ;;  %p49_p1 = scmp.ne.s32.totalorder %s653_s11, %s649_s10 }
   0xb   : > { %p50_p2 = scmp.eq.s32.totalorder %s665_s14, 0  ;;  %p55_p3 = scmp.ne.s32.totalorder %s649_s10, %s645_s9 }
   0xc   : > { %s828_s17 = smov (%p35_p0, %s33_s17), 0  ;;  %p56_p5 = scmp.eq.s32.totalorder %s423_s15, 0 }
   0xd   : > { %p723_p4 = por %p50_p2, %p49_p1  ;;  %s37_s20 = ssub.s32 %s661_s13, %s828_s17 }
   0xe   : > { %p107_p6 = scmp.eq.s32.totalorder %s423_s15, 1  ;;  %p40_p7 = scmp.eq.s32.totalorder %s37_s20, 0 }
   0xf   : > { %p729_p8 = por %p56_p5, %p55_p3  ;;  %p113_p10 = scmp.eq.s32.totalorder %s424_s16, 1 }
  0x10   : > { %p733_p9 = por %p107_p6, %p49_p1  ;;  %p426_p12 = scmp.ge.s32.totalorder %s665_s14, 2 }
  0x11   : > { %s738_s23 = scalar_select %p40_p7, %s653_s11, %s42_s18  }
  0x12   : > { %p740_p11 = por %p113_p10, %p55_p3  ;;  %p463_p13 = scmp.lt.s32.totalorder %s665_s14, 2 }
  0x13   : > { %s133_s25 = sand.u32 1, %s653_s11   ;;  %s428_s27 = sshll.u32 %s661_s13, 3 }
  0x14   : > { %s427_s26 = sshll.u32 %s133_s25, 3  ;;  %s142_s30 = scalar_lea.hbm %s815_s0, %s428_s27 }
  0x15   : > { %s137_s3 = scalar_lea.vmem [#allocation4], %s427_s26  ;;  %s144_s5 = sshll.u32 %s142_s30, 4  ;;  %s145_s5 = int_to_ptr.hbm [resolvable:$true] %s144_s5 }
  0x16   : > { %s146_s4 = sshll.u32 %s137_s3, 4  ;;  %p453_p0 = pnand %p463_p13, %p723_p4  ;;  %s147_s4 = int_to_ptr.vmem [resolvable:$true] %s146_s4 }
  0x17   : > { %p431_p1 = scmp.ge.s32.totalorder %s665_s14, 1  ;;  %p171_p2 = scmp.lt.s32.totalorder %s665_s14, 3 }
  0x18   : > { %s134_s6 = scalar_lea.sflag [#allocation5], %s133_s25  ;;  %s162_s15 = scalar_lea.hbm %s816_s1, %s428_s27 }
  0x19   : > { %455 = dma.hbm_to_vmem [thread:$0]  (!%p453_p0), %s145_s5, 128, %s147_s4, %s134_s6  }
  0x1a   : > { %p172_p3 = pnand %p431_p1, %p171_p2  ;;  %s157_s16 = scalar_lea.vmem [#allocation7], %s427_s26 }
  0x1b   : > { %s166_s18 = sshll.u32 %s157_s16, 4  ;;  %s164_s20 = sshll.u32 %s162_s15, 4  ;;  %s167_s18 = int_to_ptr.vmem [resolvable:$true] %s166_s18  ;;  %s165_s20 = int_to_ptr.hbm [resolvable:$true] %s164_s20 }
  0x1c   : > { %s154_s28 = scalar_lea.sflag [#allocation8], %s133_s25  ;;  %175 = sbr.rel (%p172_p3) target bundleno = 329 (0x149), region = 28 }
  0x1d   : > { %458 = dma.hbm_to_vmem [thread:$0]  (!%p453_p0), %s165_s20, 128, %s167_s18, %s154_s28  }
  0x1e   : > { %s759_s19 = sand.u32 (!%p172_p3), 1, %s649_s10  }
  0x1f   : > { %s762_s29 = sshll.u32 (!%p172_p3), %s759_s19, 3  ;;  %s178_s30 = scalar_lea.sflag (!%p172_p3), [#allocation5], %s759_s19 }
  0x20   : > { %s181_s3 = scalar_lea.vmem (!%p172_p3), [#allocation4], %s762_s29 }
  0x21   : > { %632 = dma.done.wait (%p729_p8), %s178_s30, 128  }
  0x22   : > { %634 = vsyncadd (%p729_p8), %s178_s30, 4294967168  ;;  %s188_s25 = scalar_lea.sflag [#allocation8], %s759_s19  ;;  %s191_s26 = scalar_lea.vmem [#allocation7], %s762_s29 }
  0x23   : > { %636 = dma.done.wait (%p729_p8), %s188_s25, 128  }
  0x24   : > { %638 = vsyncadd (%p729_p8), %s188_s25, 4294967168  ;;  %v218_v0 = vld [vmem:[%s181_s3] sm:$0xff]  ;;  %v238_v12 = vld [vmem:[%s191_s26] sm:$0xff]  ;;  %s437_s5 = sshll.u32 %s657_s12, 3  ;;  %s217_s16 = scalar_lea.vmem [#allocation9], %s762_s29 }
  0x25   : > { %v435_v1 = vmul.f32 -1.442695, %v218_v0  ;;  %s315_s15 = scalar_lea.hbm %s817_s2, %s437_s5  ;;  %s317_s18 = sshll.u32 %s217_s16, 4  ;;  %s318_s18 = int_to_ptr.vmem [resolvable:$true] %s317_s18 }
  0x26   : > { %s319_s28 = sshll.u32 %s315_s15, 4  ;;  %s305_s25 = scalar_lea.sflag [#allocation6], %s759_s19  ;;  %s320_s28 = int_to_ptr.hbm [resolvable:$true] %s319_s28 }
  0x27   : > { %513 = vpow2.f32 %v435_v1  ;;  %s593_s26 = sshra.s32 %s320_s28, 4  ;;  %s599_s29 = scalar_lea.hbm %s817_s2, 16  ;;  %s594_s26 = int_to_ptr.hbm [resolvable:$true] %s593_s26 }
  0x28   : > { %s595_s12 = scalar_lea.hbm %s594_s26, 8  ;;  %p600_p7 = scmp.lt.s32.totalorder %s594_s26, %s817_s2 }
  0x29   : > { %p596_p4 = scmp.ne.s32.totalorder %s594_s26, %s595_s12  ;;  %p601_p8 = scmp.lt.s32.totalorder %s599_s29, %s595_s12 }
  0x2b   : > { %p597_p5 = pnand %p596_p4, %p733_p9  ;;  %p602_p10 = por %p601_p8, %p600_p7 }
  0x2d   : > { %v514_v2 = vpop.eup %513  ;;  %p598_p6 = pneg %p597_p5 }
  0x2e   : > { %v222_v3 = vadd.f32 1.0, %v514_v2 }
  0x2f   : > { %p603_p13 = pnand %p602_p10, %p598_p6 }
  0x30   : > { %515 = vrcp.f32 %v222_v3  ;;  %v234_v6 = vand.u32 2147483648, %v222_v3  ;;  %vm228_vm0 = vweird.f32 %v222_v3  ;;  %v232_v8 = vand.u32 2147483647, %v222_v3 }
  0x32   : > { %v235_v10 = vor.u32 1.1754944e-38, %v234_v6  ;;  %vm233_vm3 = vcmp.eq.f32.partialorder %v232_v8, 8.507059e+37 }
  0x36   : > { %v516_v4 = vpop.eup %515 }
  0x37   : > { %v224_v5 = vmul.f32 %v516_v4, %v222_v3  ;;  %vm229_vm1 = vweird.f32 %v516_v4 }
  0x38   : > { %vm230_vm2 = vmor %vm228_vm0, %vm229_vm1 }
  0x39   : > { %v225_v7 = vsub.f32 1.0, %v224_v5 }
  0x3b   : > { %v226_v9 = vmul.f32 %v516_v4, %v225_v7 }
  0x3d   : > { %v227_v11 = vadd.f32 %v516_v4, %v226_v9 }
  0x3f   : > { %v231_v13 = vsel %vm230_vm2, %v516_v4, %v227_v11 }
  0x40   : > { %v236_v14 = vsel %vm233_vm3, %v235_v10, %v231_v13 }
  0x41   : > { %v239_v15 = vmul.f32 %v238_v12, %v236_v14  ;;  %v240_v16 = vadd.f32 %v238_v12, %v236_v14 }
  0x43   : > { %263 = vadd.xlane.f32.xlu0 %v239_v15 }
  0x4b   : > { %273 = vadd.xlane.f32.xlu0 %v240_v16 }
  0xb6   : > { %v264_v17 = vpop.xlane.xlu0 %263 }
  0xb7   : > { %v265_v18 = vrot.slane %v264_v17, 4 }
  0xb9   : > { %v266_v19 = vadd.f32 %v265_v18, %v264_v17 }
  0xbb   : > { %v267_v20 = vrot.slane %v266_v19, 2 }
  0xbd   : > { %v268_v21 = vadd.f32 %v267_v20, %v266_v19 }
  0xbe   : > { %v274_v22 = vpop.xlane.xlu0 %273 }
  0xbf   : > { %v275_v23 = vrot.slane %v274_v22, 4  ;;  %v269_v24 = vrot.slane %v268_v21, 1 }
  0xc1   : > { %v276_v25 = vadd.f32 %v275_v23, %v274_v22  ;;  %v270_v26 = vadd.f32 %v269_v24, %v268_v21 }
  0xc3   : > { %v277_v27 = vrot.slane %v276_v25, 2  ;;  %440 = vpush %v270_v26 }
  0xc5   : > { %v278_v28 = vadd.f32 %v277_v27, %v276_v25 }
  0xc7   : > { %v279_v29 = vrot.slane %v278_v28, 1 }
  0xc9   : > { %v280_v30 = vadd.f32 %v279_v29, %v278_v28 }
  0xcb   : > { %442 = vpush %v280_v30 }
  0xf4   : > { %s441_s21 = spop %440 }
  0xf5   : > { %s282_s6 = smul.f32 2.0, %s441_s21 }
  0xf7   : > { %s283_s20 = sadd.f32 1e-07, %s282_s6 }
  0xfc   : > { %s443_s27 = spop %442 }
  0xfd   : > { %s284_s4 = sadd.f32 1e-07, %s443_s27 }
  0xff   : > { %v285_v31 = vstv %s284_s4 }
 0x100   : > { %517 = vrcp.f32 %v285_v31  ;;  %v297_v35 = vand.u32 2147483648, %v285_v31  ;;  %v295_v37 = vand.u32 2147483647, %v285_v31  ;;  %vm291_vm5 = vweird.f32 %v285_v31 }
 0x102   : > { %v298_v39 = vor.u32 1.1754944e-38, %v297_v35  ;;  %vm296_vm7 = vcmp.eq.f32.partialorder %v295_v37, 8.507059e+37 }
 0x106   : > { %v518_v32 = vpop.eup %517 }
 0x107   : > { %v287_v33 = vmul.f32 %v518_v32, %v285_v31  ;;  %vm292_vm4 = vweird.f32 %v518_v32 }
 0x108   : > { %vm293_vm6 = vmor %vm291_vm5, %vm292_vm4 }
 0x109   : > { %v288_v34 = vsub.f32 1.0, %v287_v33 }
 0x10b   : > { %v289_v36 = vmul.f32 %v518_v32, %v288_v34 }
 0x10d   : > { %v290_v38 = vadd.f32 %v518_v32, %v289_v36 }
 0x10f   : > { %v294_v40 = vsel %vm293_vm6, %v518_v32, %v290_v38 }
 0x110   : > { %v299_v41 = vsel %vm296_vm7, %v298_v39, %v294_v40 }
 0x111   : > { %444 = vpush %v299_v41 }
 0x142   : > { %s445_s30 = spop %444 }
 0x143   : > { %s301_s3 = smul.f32 %s445_s30, %s283_s20 }
 0x145   : > { %v302_v42 = vstv %s301_s3 }
 0x146   : > { %303 = vst [vmem:[%s217_s16] sm:$0xff] %v302_v42 }
 0x147   : > { %606 = shalt.err (!%p603_p13)
}
 0x148   : > { %450 = dma.vmem_to_hbm [thread:$0]  (%p733_p9), %s318_s18, 128, %s320_s28, %s305_s25  }
 0x149 PF: > { %s331_s19 = sand.u32 1, %s645_s9   ;;  %p460_p0 = pnand %p426_p12, %p740_p11 }
 0x14a   : > { %s332_s6 = scalar_lea.sflag [#allocation6], %s331_s19 }
 0x14b   : > { %p461_p1 = pneg %p460_p0 }
 0x14d   : > { %640 = dma.done.wait (%p461_p1), %s332_s6, 128  }
 0x14e   : > { %642 = vsyncadd (%p461_p1), %s332_s6, 4294967168  ;;  %s21_s14 = sadd.s32 1, %s665_s14   ;;  %s822_s9 = smov %s649_s10 }
 0x14f   : > { %p18_p2 = scmp.ge.s32.totalorder %s21_s14, 4   ;;  %s823_s10 = smov %s653_s11 }
 0x150   : > { %s824_s11 = smov %s738_s23  ;;  %s825_s12 = smov %s661_s13 }
 0x151   : > { %s826_s13 = smov %s828_s17  ;;  %20 = sbr.rel (!%p18_p2) target bundleno = 8 (0x8), region = 98 }
 0x156   :  { %338 = vsyncpa [#allocation5], 1 }
 0x157   :  { %340 = vsyncpa [#allocation5 + $0x1], 1 }
 0x158   :  { %341 = vsyncpa [#allocation8], 1 }
 0x159   :  { %343 = vsyncpa [#allocation8 + $0x1], 1 }
 0x15a   :  { %344 = vsyncpa [#allocation6], 1 }
 0x15b   :  { %346 = vsyncpa [#allocation6 + $0x1], 1 }

</bundles_post_ra>
